<compile_context>
chip_gen: v6e
topology: v6e:2x2x1
jax: 0.10.0
libtpu: 0.0.40
codegen_flags: <defaults>
</compile_context>

<pallas_src>
import functools

import jax
import jax.numpy as jnp
from jax.experimental import pallas as pl
from jax.experimental.pallas import tpu as pltpu


def _round_up(x: int, m: int) -> int:
    return ((x + m - 1) // m) * m


def _encoder_kernel(ga_ref, gb_ref, w1a_ref, w1b_ref, b1_ref, w2_ref, b2_ref,
                    y_ref):
    """Fused fc1 (split-K) + ReLU + fused fc2 ([mu|logvar] padded slab)."""
    # fc1: two bf16 MXU passes (one per input half), f32 accumulation.
    h = jnp.dot(ga_ref[...], w1a_ref[...], preferred_element_type=jnp.float32)
    h = h + jnp.dot(gb_ref[...], w1b_ref[...],
                    preferred_element_type=jnp.float32)
    h = jnp.maximum(h + b1_ref[...], 0.0)

    # fc2: one bf16 MXU pass into the lane-dense padded [mu|logvar|0...] slab.
    y = jnp.dot(h.astype(w2_ref.dtype), w2_ref[...],
                preferred_element_type=jnp.float32)
    y_ref[...] = (y + b2_ref[...]).astype(y_ref.dtype)


def prepare_params(params):
    """One-time repack of PyTorch-layout params into kernel-ready layout.

    - transposes nn.Linear (out, in) weights to (in, out)
    - splits W1 into the gti / gti_next halves (no runtime concat needed)
    - fuses fc2_mu / fc2_logvar into one weight / bias
    - zero-pads hidden and the fused output width up to multiples of 128
    - casts weights to bf16 (biases stay f32)
    """
    hidden_dim = params["w1"].shape[0]
    input_dim = params["w1"].shape[1] // 2
    latent_dim = params["wmu"].shape[0]

    hidden_pad = _round_up(hidden_dim, 128)
    out_pad = _round_up(2 * latent_dim, 128)

    w1_t = params["w1"].T  # (2*input_dim, hidden)

    w1a = jnp.zeros((input_dim, hidden_pad), jnp.float32)
    w1a = w1a.at[:, :hidden_dim].set(w1_t[:input_dim])
    w1b = jnp.zeros((input_dim, hidden_pad), jnp.float32)
    w1b = w1b.at[:, :hidden_dim].set(w1_t[input_dim:])
    b1 = jnp.zeros((1, hidden_pad), jnp.float32)
    b1 = b1.at[0, :hidden_dim].set(params["b1"])

    w2 = jnp.zeros((hidden_pad, out_pad), jnp.float32)
    w2 = w2.at[:hidden_dim, :latent_dim].set(params["wmu"].T)
    w2 = w2.at[:hidden_dim, latent_dim:2 * latent_dim].set(params["wlv"].T)
    b2 = jnp.zeros((1, out_pad), jnp.float32)
    b2 = b2.at[0, :latent_dim].set(params["bmu"])
    b2 = b2.at[0, latent_dim:2 * latent_dim].set(params["blv"])

    return {
        "w1a": w1a.astype(jnp.bfloat16),
        "w1b": w1b.astype(jnp.bfloat16),
        "b1": b1,
        "w2": w2.astype(jnp.bfloat16),
        "b2": b2,
        "latent_dim": latent_dim,
        "hidden_dim": hidden_dim,
    }


@functools.partial(jax.jit, static_argnames=("latent_dim", "tile_b"))
def _encoder_forward_impl(gti, gti_next, w1a, w1b, b1, w2, b2, *,
                          latent_dim, tile_b=None):
    B, input_dim = gti.shape
    hidden_pad = w1a.shape[1]
    out_pad = w2.shape[1]

    # bf16 MXU feeds (weights already bf16 from prepare_params).
    ga = gti.astype(jnp.bfloat16)
    gb = gti_next.astype(jnp.bfloat16)

    # Batch tiling: tiny B -> single tile; otherwise guarantee >= 2 grid steps
    # (v7x megacore), multiple-of-16 rows (bf16 sublane pack), <= 1024 rows.
    if tile_b is None:
        if B <= 16:
            tile_b = B
        else:
            tile_b = min(1024, _round_up(pl.cdiv(B, 2), 16))
    tile_b = max(1, min(tile_b, B))
    num_tiles = pl.cdiv(B, tile_b)

    flops = 2 * B * (2 * input_dim * hidden_pad + hidden_pad * out_pad)
    bytes_accessed = (
        2 * (2 * B * input_dim)                       # ga, gb (bf16)
        + 2 * (2 * input_dim * hidden_pad)            # w1a, w1b (bf16)
        + 4 * hidden_pad                              # b1 (f32)
        + 2 * hidden_pad * out_pad                    # w2 (bf16)
        + 4 * out_pad                                 # b2 (f32)
        + 4 * B * out_pad                             # y (f32)
    )

    y = pl.pallas_call(
        _encoder_kernel,
        out_shape=jax.ShapeDtypeStruct((B, out_pad), jnp.float32),
        grid=(num_tiles,),
        in_specs=[
            pl.BlockSpec((tile_b, input_dim), lambda i: (i, 0)),      # gti
            pl.BlockSpec((tile_b, input_dim), lambda i: (i, 0)),      # gti_next
            pl.BlockSpec((input_dim, hidden_pad), lambda i: (0, 0)),  # W1a
            pl.BlockSpec((input_dim, hidden_pad), lambda i: (0, 0)),  # W1b
            pl.BlockSpec((1, hidden_pad), lambda i: (0, 0)),          # b1
            pl.BlockSpec((hidden_pad, out_pad), lambda i: (0, 0)),    # [Wmu|Wlv]
            pl.BlockSpec((1, out_pad), lambda i: (0, 0)),             # [bmu|blv]
        ],
        out_specs=pl.BlockSpec((tile_b, out_pad), lambda i: (i, 0)),
        compiler_params=pltpu.CompilerParams(
            dimension_semantics=("parallel",),
            vmem_limit_bytes=64 * 1024 * 1024),
        cost_estimate=pl.CostEstimate(
            flops=flops, transcendentals=0, bytes_accessed=bytes_accessed),
    )(ga, gb, w1a, w1b, b1, w2, b2)

    # Slice the padded [mu | logvar | zeros] slab; clamp fuses into the copy.
    mu = y[:, :latent_dim]
    logvar = jnp.clip(y[:, latent_dim:2 * latent_dim], -5.0, 5.0)
    return mu, logvar


def encoder_forward(gti, gti_next, packed, tile_b=None):
    """Full Encoder forward; `packed` is the output of prepare_params."""
    return _encoder_forward_impl(
        gti, gti_next, packed["w1a"], packed["w1b"], packed["b1"],
        packed["w2"], packed["b2"],
        latent_dim=packed["latent_dim"], tile_b=tile_b)


def init_params(key, input_dim, latent_dim, hidden_dim):
    """Deterministic synthetic parameters matching nn.Linear shapes."""
    ks = jax.random.split(key, 6)
    # PyTorch Linear: weight (out, in), bias (out,)
    w1 = jax.random.normal(ks[0], (hidden_dim, input_dim * 2), jnp.float32) * 0.1
    b1 = jax.random.normal(ks[1], (hidden_dim,), jnp.float32) * 0.1
    wmu = jax.random.normal(ks[2], (latent_dim, hidden_dim), jnp.float32) * 0.1
    bmu = jax.random.normal(ks[3], (latent_dim,), jnp.float32) * 0.1
    wlv = jax.random.normal(ks[4], (latent_dim, hidden_dim), jnp.float32) * 0.1
    blv = jax.random.normal(ks[5], (latent_dim,), jnp.float32) * 0.1
    return {"w1": w1, "b1": b1, "wmu": wmu, "bmu": bmu, "wlv": wlv, "blv": blv}


def reference_forward_f32(gti, gti_next, params):
    """Plain-JAX f32 reference mirroring the PyTorch module exactly."""
    x = jnp.concatenate([gti, gti_next], axis=-1)
    h = jax.nn.relu(x @ params["w1"].T + params["b1"])
    mu = h @ params["wmu"].T + params["bmu"]
    lv = jnp.clip(h @ params["wlv"].T + params["blv"], -5.0, 5.0)
    return mu, lv


def reference_forward_bf16(gti, gti_next, params):
    """Reference using the same bf16-feed / f32-accumulate numerics as the kernel."""
    c = lambda a: a.astype(jnp.bfloat16)
    x = jnp.concatenate([gti, gti_next], axis=-1)
    h = jnp.maximum(
        jnp.dot(c(x), c(params["w1"].T), preferred_element_type=jnp.float32)
        + params["b1"], 0.0)
    mu = jnp.dot(c(h), c(params["wmu"].T),
                 preferred_element_type=jnp.float32) + params["bmu"]
    lv = jnp.dot(c(h), c(params["wlv"].T),
                 preferred_element_type=jnp.float32) + params["blv"]
    return mu, jnp.clip(lv, -5.0, 5.0)


if __name__ == "__main__":
    B, input_dim, latent_dim, hidden_dim = 8, 16, 8, 32

    key = jax.random.PRNGKey(0)
    k_p, k_a, k_b = jax.random.split(key, 3)
    params = init_params(k_p, input_dim, latent_dim, hidden_dim)
    packed = prepare_params(params)   # one-time layout work, out of the hot path

    # Scale inputs so the pre-clamp logvar exercises the clamp path a little.
    gti = jax.random.normal(k_a, (B, input_dim), jnp.float32) * 3.0
    gti_next = jax.random.normal(k_b, (B, input_dim), jnp.float32) * 3.0

    mu, logvar = encoder_forward(gti, gti_next, packed)
    jax.block_until_ready((mu, logvar))

    assert mu.shape == (B, latent_dim) and logvar.shape == (B, latent_dim)

    # Tight check against a reference with matching bf16-feed numerics.
    mu_b, lv_b = reference_forward_bf16(gti, gti_next, params)
    assert jnp.allclose(mu, mu_b, atol=3e-3, rtol=3e-3)
    assert jnp.allclose(logvar, lv_b, atol=3e-3, rtol=3e-3)

    # Loose check against the exact f32 PyTorch semantics (bf16 MXU feeds).
    mu_f, lv_f = reference_forward_f32(gti, gti_next, params)
    assert jnp.allclose(mu, mu_f, atol=1e-1, rtol=5e-2)
    assert jnp.allclose(logvar, lv_f, atol=1e-1, rtol=5e-2)
    assert float(jnp.max(logvar)) <= 5.0 and float(jnp.min(logvar)) >= -5.0

    print("KERNEL_OK")
</pallas_src>

<mosaic_0001>
module attributes {stable_mosaic.version = 11 : i64} {
  func.func @_encoder_kernel(%arg0: i32, %arg1: memref<8x16xbf16, #tpu.memory_space<vmem>>, %arg2: memref<8x16xbf16, #tpu.memory_space<vmem>>, %arg3: memref<16x128xbf16, #tpu.memory_space<vmem>>, %arg4: memref<16x128xbf16, #tpu.memory_space<vmem>>, %arg5: memref<1x128xf32, #tpu.memory_space<vmem>>, %arg6: memref<128x128xbf16, #tpu.memory_space<vmem>>, %arg7: memref<1x128xf32, #tpu.memory_space<vmem>>, %arg8: memref<8x128xf32, #tpu.memory_space<vmem>>) attributes {dimension_semantics = [#tpu.dimension_semantics<parallel>], iteration_bounds = array<i64: 1>, scalar_prefetch = 0 : i64, scratch_operands = 0 : i64, tpu.core_type = #tpu.core_type<tc>, window_params = [{transform_indices = @transform_0, window_bounds = array<i64: 8, 16>}, {transform_indices = @transform_1, window_bounds = array<i64: 8, 16>}, {pipeline_mode = #tpu.pipeline_mode<synchronous>, transform_indices = @transform_2, window_bounds = array<i64: 16, 128>}, {pipeline_mode = #tpu.pipeline_mode<synchronous>, transform_indices = @transform_3, window_bounds = array<i64: 16, 128>}, {pipeline_mode = #tpu.pipeline_mode<synchronous>, transform_indices = @transform_4, window_bounds = array<i64: 1, 128>}, {pipeline_mode = #tpu.pipeline_mode<synchronous>, transform_indices = @transform_5, window_bounds = array<i64: 128, 128>}, {pipeline_mode = #tpu.pipeline_mode<synchronous>, transform_indices = @transform_6, window_bounds = array<i64: 1, 128>}, {transform_indices = @transform_7, window_bounds = array<i64: 8, 128>}]} {
    %c0 = arith.constant 0 : index
    %c0_0 = arith.constant 0 : index
    %0 = vector.load %arg1[%c0, %c0_0] : memref<8x16xbf16, #tpu.memory_space<vmem>>, vector<8x16xbf16>
    %c0_1 = arith.constant 0 : index
    %c0_2 = arith.constant 0 : index
    %1 = vector.load %arg3[%c0_1, %c0_2] : memref<16x128xbf16, #tpu.memory_space<vmem>>, vector<16x128xbf16>
    %cst = arith.constant dense<0.000000e+00> : vector<8x128xf32>
    %2 = tpu.matmul %0, %1, %cst {dimension_numbers = #tpu.dot_dimension_numbers<[1], [0], [0], [1], [0, 0, 1, 1], [], []>} : vector<8x16xbf16>, vector<16x128xbf16>, vector<8x128xf32> -> vector<8x128xf32>
    %c0_3 = arith.constant 0 : index
    %c0_4 = arith.constant 0 : index
    %3 = vector.load %arg2[%c0_3, %c0_4] : memref<8x16xbf16, #tpu.memory_space<vmem>>, vector<8x16xbf16>
    %c0_5 = arith.constant 0 : index
    %c0_6 = arith.constant 0 : index
    %4 = vector.load %arg4[%c0_5, %c0_6] : memref<16x128xbf16, #tpu.memory_space<vmem>>, vector<16x128xbf16>
    %cst_7 = arith.constant dense<0.000000e+00> : vector<8x128xf32>
    %5 = tpu.matmul %3, %4, %cst_7 {dimension_numbers = #tpu.dot_dimension_numbers<[1], [0], [0], [1], [0, 0, 1, 1], [], []>} : vector<8x16xbf16>, vector<16x128xbf16>, vector<8x128xf32> -> vector<8x128xf32>
    %6 = arith.addf %2, %5 : vector<8x128xf32>
    %c0_8 = arith.constant 0 : index
    %c0_9 = arith.constant 0 : index
    %7 = vector.load %arg5[%c0_8, %c0_9] : memref<1x128xf32, #tpu.memory_space<vmem>>, vector<1x128xf32>
    %8 = vector.broadcast %7 : vector<1x128xf32> to vector<8x128xf32>
    %9 = arith.addf %6, %8 : vector<8x128xf32>
    %cst_10 = arith.constant 0.000000e+00 : f32
    %10 = vector.broadcast %cst_10 : f32 to vector<8x128xf32>
    %11 = arith.maximumf %9, %10 : vector<8x128xf32>
    %12 = arith.truncf %11 : vector<8x128xf32> to vector<8x128xbf16>
    %c0_11 = arith.constant 0 : index
    %c0_12 = arith.constant 0 : index
    %13 = vector.load %arg6[%c0_11, %c0_12] : memref<128x128xbf16, #tpu.memory_space<vmem>>, vector<128x128xbf16>
    %cst_13 = arith.constant dense<0.000000e+00> : vector<8x128xf32>
    %14 = tpu.matmul %12, %13, %cst_13 {dimension_numbers = #tpu.dot_dimension_numbers<[1], [0], [0], [1], [0, 0, 1, 1], [], []>} : vector<8x128xbf16>, vector<128x128xbf16>, vector<8x128xf32> -> vector<8x128xf32>
    %c0_14 = arith.constant 0 : index
    %c0_15 = arith.constant 0 : index
    %15 = vector.load %arg7[%c0_14, %c0_15] : memref<1x128xf32, #tpu.memory_space<vmem>>, vector<1x128xf32>
    %16 = vector.broadcast %15 : vector<1x128xf32> to vector<8x128xf32>
    %17 = arith.addf %14, %16 : vector<8x128xf32>
    %c0_16 = arith.constant 0 : index
    %c0_17 = arith.constant 0 : index
    %18 = vector.load %arg8[%c0_16, %c0_17] : memref<8x128xf32, #tpu.memory_space<vmem>>, vector<8x128xf32>
    tpu.vector_store %arg8[%c0_16, %c0_17], %17 {strides = array<i32>} : memref<8x128xf32, #tpu.memory_space<vmem>>, vector<8x128xf32>,
    return
  }
  func.func @transform_0(%arg0: i32) -> (i32, i32) {
    %c0_i32 = arith.constant 0 : i32
    %c0_i32_0 = arith.constant 0 : i32
    return %arg0, %c0_i32 : i32, i32
  }
  func.func @transform_1(%arg0: i32) -> (i32, i32) {
    %c0_i32 = arith.constant 0 : i32
    %c0_i32_0 = arith.constant 0 : i32
    return %arg0, %c0_i32 : i32, i32
  }
  func.func @transform_2(%arg0: i32) -> (i32, i32) {
    %c0_i32 = arith.constant 0 : i32
    %c0_i32_0 = arith.constant 0 : i32
    %c0_i32_1 = arith.constant 0 : i32
    return %c0_i32, %c0_i32_0 : i32, i32
  }
  func.func @transform_3(%arg0: i32) -> (i32, i32) {
    %c0_i32 = arith.constant 0 : i32
    %c0_i32_0 = arith.constant 0 : i32
    %c0_i32_1 = arith.constant 0 : i32
    return %c0_i32, %c0_i32_0 : i32, i32
  }
  func.func @transform_4(%arg0: i32) -> (i32, i32) {
    %c0_i32 = arith.constant 0 : i32
    %c0_i32_0 = arith.constant 0 : i32
    %c0_i32_1 = arith.constant 0 : i32
    return %c0_i32, %c0_i32_0 : i32, i32
  }
  func.func @transform_5(%arg0: i32) -> (i32, i32) {
    %c0_i32 = arith.constant 0 : i32
    %c0_i32_0 = arith.constant 0 : i32
    %c0_i32_1 = arith.constant 0 : i32
    return %c0_i32, %c0_i32_0 : i32, i32
  }
  func.func @transform_6(%arg0: i32) -> (i32, i32) {
    %c0_i32 = arith.constant 0 : i32
    %c0_i32_0 = arith.constant 0 : i32
    %c0_i32_1 = arith.constant 0 : i32
    return %c0_i32, %c0_i32_0 : i32, i32
  }
  func.func @transform_7(%arg0: i32) -> (i32, i32) {
    %c0_i32 = arith.constant 0 : i32
    %c0_i32_0 = arith.constant 0 : i32
    return %arg0, %c0_i32 : i32, i32
  }
}

</mosaic_0001>

<bundles_post_ra>
// kernel: _encoder_forward_impl.1
= control target key start
LH: loop header
LB: loop body
LE: loop exit
PB: predicated region body
PF: predicated region fallthrough
CT: control target
= control target key end

     0   :  { %12 = vsyncpa [#allocation3], 0  ;;  %s369_s24 = smov [#allocation2]   ;;  %s438_s0 = inlined_call_operand.vmem [shape: bf16[8,16], index: 0, kind: input, shape index: {}]   ;;  %s439_s1 = inlined_call_operand.vmem [shape: bf16[8,16], index: 1, kind: input, shape index: {}]   ;;  %s440_s2 = inlined_call_operand.vmem [shape: bf16[16,128], index: 2, kind: input, shape index: {}]   ;;  %s441_s3 = inlined_call_operand.vmem [shape: bf16[16,128], index: 3, kind: input, shape index: {}]   ;;  %s442_s4 = inlined_call_operand.vmem [shape: f32[1,128], index: 4, kind: input, shape index: {}]   ;;  %s443_s5 = inlined_call_operand.hbm [shape: bf16[128,128], index: 5, kind: input, shape index: {}]   ;;  %s444_s6 = inlined_call_operand.vmem [shape: f32[1,128], index: 6, kind: input, shape index: {}]   ;;  %s445_s7 = inlined_call_operand.vmem [shape: f32[8,128], index: 7, kind: output, shape index: {}]  }
   0x1   :  { %s28_s25 = sshll.u32 %s369_s24, 4  ;;  %s29_s25 = int_to_ptr.vmem [resolvable:$true] %s28_s25 }
   0x2   :  { %s355_s26 = scalar_lea.vmem %s29_s25, 1024  ;;  %p360_p1 = scmp.lt.s32.totalorder %s29_s25, %s29_s25 }
   0x3   :  { %p356_p0 = scmp.ne.s32.totalorder %s29_s25, %s355_s26  ;;  %p361_p2 = scmp.lt.s32.totalorder %s355_s26, %s355_s26 }
   0x5   :  { %p362_p3 = por %p361_p2, %p360_p1 }
   0x7   :  { %p363_p4 = pnand %p362_p3, %p356_p0 }
   0x9   :  { %366 = shalt.err (!%p363_p4)
}
   0xa   :  { %s370_s27 = smov 64   ;;  %s371_s28 = smov 4  }
   0xb   :  { %34 = dma.hbm_to_vmem [thread:$0]  %s443_s5, 1024, %s29_s25, [#allocation3], %s370_s27, %s370_s27, %s371_s28  }
   0xc   :  { %367 = dma.done.wait [#allocation3], 1024  }
   0xd   :  { %368 = vsyncadd [#allocation3], 4294966272  ;;  %v372_v0 = vmov 0.0   ;;  %vm373_vm0 = vmmov 0   ;;  %v337_v1 = vld [vmem:[%s441_s3] sm:$0xff]   ;;  %vm53_vm1 = vcmask 130048  }
   0xe   :  { %300 = vmatprep.subr.bf16.mxu1 %v372_v0  ;;  %302 = vmatprep.mubr.msk.bf16.mxu1 %vm373_vm0, %v372_v0  ;;  %v44_v2 = vld [vmem:[%s439_s1] sm:$0xf]  ;;  %v339_v4 = vld [vmem:[#allocation2 + $0x38] sm:$0xff]   ;;  %v340_v5 = vld [vmem:[#allocation2 + $0x30] sm:$0xff]  }
   0xf   :  { %312 = vmatprep.subr.bf16.mxu0 %v372_v0  ;;  %328 = vmatprep.mubr.msk.bf16.mxu0 %vm373_vm0, %v372_v0  ;;  %v338_v3 = vld [vmem:[%s440_s2] sm:$0xff]   ;;  %v341_v6 = vld [vmem:[#allocation2 + $0x28] sm:$0xff]   ;;  %v343_v9 = vld [vmem:[#allocation2 + $0x18] sm:$0xff]  }
  0x10   :  { %301 = vmatpush3.bf16.msra.mxu1 %v337_v1  ;;  %313 = vmatpush3.bf16.msra.mxu0 %v339_v4  ;;  %v41_v7 = vld [vmem:[%s438_s0] sm:$0xf]  ;;  %v344_v10 = vld [vmem:[#allocation2 + $0x10] sm:$0xff]   ;;  %v345_v11 = vld [vmem:[#allocation2 + $0x8] sm:$0xff]  }
  0x11   :  { %306 = vmatprep.subr.bf16.mxu1 %v372_v0  ;;  %314 = vmatprep.subr.bf16.mxu0 %v372_v0  ;;  %v342_v8 = vld [vmem:[#allocation2 + $0x20] sm:$0xff]  }
  0x12   :  { %v346_v12 = vld [vmem:[#allocation2] sm:$0xff]  }
  0x13   :  { %303 = vmatmul.mubr.msk.bf16.vlgmr.msra.gmra.mxu1 %vm53_vm1, %v44_v2  ;;  %v277_v18 = vld [vmem:[%s442_s4] ss:$0 sm:$0xff] }
  0x14   :  { %307 = vmatpush3.bf16.msra.mxu1 %v338_v3  ;;  %308 = vmatprep.mubr.msk.bf16.mxu1 %vm373_vm0, %v372_v0  ;;  %v278_v26 = vld [vmem:[%s444_s6] ss:$0 sm:$0xff] }
  0x15   :  { %315 = vmatpush3.bf16.msra.mxu0 %v340_v5 }
  0x16   :  { %316 = vmatprep.subr.bf16.mxu0 %v372_v0 }
  0x19   :  { %317 = vmatpush3.bf16.msra.mxu0 %v341_v6 }
  0x1a   :  { %318 = vmatprep.subr.bf16.mxu0 %v372_v0 }
  0x1b   :  { %309 = vmatmul.mubr.msk.bf16.vlgmr.msra.gmra.mxu1 %vm53_vm1, %v41_v7 }
  0x1d   :  { %319 = vmatpush3.bf16.msra.mxu0 %v342_v8 }
  0x1e   :  { %320 = vmatprep.subr.bf16.mxu0 %v372_v0 }
  0x21   :  { %321 = vmatpush3.bf16.msra.mxu0 %v343_v9 }
  0x22   :  { %322 = vmatprep.subr.bf16.mxu0 %v372_v0 }
  0x25   :  { %323 = vmatpush3.bf16.msra.mxu0 %v344_v10 }
  0x26   :  { %324 = vmatprep.subr.bf16.mxu0 %v372_v0 }
  0x29   :  { %325 = vmatpush3.bf16.msra.mxu0 %v345_v11 }
  0x2a   :  { %326 = vmatprep.subr.bf16.mxu0 %v372_v0 }
  0x2d   :  { %327 = vmatpush3.bf16.msra.mxu0 %v346_v12 }
  0xd3   :  { %v91_v13 = vpop.f32.mrf.mxu1 }
  0xd5   :  { %v304_v14 = vpop.f32.mrf.mxu1 }
  0xd7   :  { %v94_v15 = vpop.f32.mrf.mxu1 }
  0xd9   :  { %v305_v16 = vpop.f32.mrf.mxu1 }
  0xdb   :  { %v140_v17 = vpop.f32.mrf.mxu1 }
  0xdc   :  { %v141_v19 = vadd.f32 %v140_v17, %v91_v13 }
  0xdd   :  { %v310_v20 = vpop.f32.mrf.mxu1 }
  0xde   :  { %v153_v21 = vadd.f32 %v277_v18, %v141_v19 }
  0xdf   :  { %v143_v22 = vpop.f32.mrf.mxu1 }
  0xe0   :  { %v154_v23 = vmax.f32 %v153_v21, 0.0 }
  0xe1   :  { %v311_v24 = vpop.f32.mrf.mxu1 }
  0xe2   :  { %v155_v25 = vpack.c.bf16 %v154_v23, %v154_v23 }
  0xe4   :  { %329 = vmatmul.mubr.bf16.vlgmr.msra.gmra.mxu0 %v155_v25 }
 0x1a4   :  { %v261_v27 = vpop.f32.mrf.mxu0 }
 0x1a5   :  { %v262_v28 = vadd.f32 %v278_v26, %v261_v27 }
 0x1a6   :  { %v330_v29 = vpop.f32.mrf.mxu0 }
 0x1a7   :  { %267 = vst [vmem:[%s445_s7] sm:$0xff] %v262_v28 }
 0x1a8   :  { %v264_v30 = vpop.f32.mrf.mxu0 }
 0x1aa   :  { %v331_v31 = vpop.f32.mrf.mxu0 }
 0x1ab   :  { %272 = vsyncpa [#allocation3], 1 }

</bundles_post_ra>
